<compile_context>
chip_gen: v7x
topology: tpu7x:2x2x1
jax: 0.10.0
libtpu: 0.0.40
codegen_flags: <defaults>
</compile_context>

<pallas_src>
import functools

import jax
import jax.numpy as jnp
from jax.experimental import pallas as pl
from jax.experimental.pallas import tpu as pltpu

LANE = 128  # padded feature width (one full vreg lane span)


# ----------------------------------------------------------------------------
# Kernel
# ----------------------------------------------------------------------------
def _mlp_kernel(x_ref, w_ref, b_ref, o_ref, *, num_layers):
    """One row-tile of the MLP: x (TILE_M, 128) bf16 -> out (TILE_M, 128) f32."""
    x = x_ref[...]                                            # (TILE_M, LANE) bf16
    y = None
    # Static unroll over layers (small L) keeps full LLO scheduler visibility.
    for layer in range(num_layers):
        y = (jnp.dot(x, w_ref[layer], preferred_element_type=jnp.float32)
             + b_ref[layer])                                  # (TILE_M, LANE) f32
        if layer < num_layers - 1:
            x = jnp.maximum(y, 0.0).astype(jnp.bfloat16)      # ReLU, feed next MXU op
    o_ref[...] = y


# ----------------------------------------------------------------------------
# One-time (cacheable) parameter preparation — hoisted out of the call path.
# ----------------------------------------------------------------------------
def prepare_mlp_params(weights, biases):
    """Pad each layer to (LANE, LANE) and stack into two contiguous slabs."""
    num_layers = len(weights)
    w_stack = jnp.zeros((num_layers, LANE, LANE), jnp.float32)
    b_stack = jnp.zeros((num_layers, 1, LANE), jnp.float32)
    for l, (w, b) in enumerate(zip(weights, biases)):
        cin, cout = w.shape
        assert cin <= LANE and cout <= LANE, "widen LANE / add a K-grid for big layers"
        w_stack = w_stack.at[l, :cin, :cout].set(w)
        b_stack = b_stack.at[l, 0, :cout].set(b.reshape(-1))
    return w_stack.astype(jnp.bfloat16), b_stack


# ----------------------------------------------------------------------------
# Forward wrapper
# ----------------------------------------------------------------------------
@functools.partial(jax.jit, static_argnames=("num_layers", "out_dim", "tile_m"))
def mlp_forward(x, w_stack, b_stack, *, num_layers, out_dim, tile_m=128):
    lead = x.shape[:-1]
    in_dim = x.shape[-1]
    x2 = x.reshape(-1, in_dim)
    m = x2.shape[0]
    m_pad = pl.cdiv(m, tile_m) * tile_m

    # Lane-dense, row-padded bf16 activation slab.
    xp = jnp.zeros((m_pad, LANE), jnp.bfloat16)
    xp = xp.at[:m, :in_dim].set(x2.astype(jnp.bfloat16))

    num_w = w_stack.shape[0]
    grid = (m_pad // tile_m,)

    out = pl.pallas_call(
        functools.partial(_mlp_kernel, num_layers=num_layers),
        out_shape=jax.ShapeDtypeStruct((m_pad, LANE), jnp.float32),
        grid_spec=pltpu.PrefetchScalarGridSpec(
            num_scalar_prefetch=0,
            grid=grid,
            in_specs=[
                # activations: blocked per grid step (pipelined)
                pl.BlockSpec((tile_m, LANE), lambda i: (i, 0)),
                # weight slab: resident in VMEM across the whole grid
                pl.BlockSpec((num_w, LANE, LANE), lambda i: (0, 0, 0)),
                # bias slab: resident in VMEM across the whole grid
                pl.BlockSpec((num_w, 1, LANE), lambda i: (0, 0, 0)),
            ],
            out_specs=pl.BlockSpec((tile_m, LANE), lambda i: (i, 0)),
        ),
        compiler_params=pltpu.CompilerParams(
            dimension_semantics=("parallel",),   # shard row tiles across TCs (v7x)
        ),
    )(xp, w_stack, b_stack)

    return out[:m, :out_dim].reshape(*lead, out_dim)


# ----------------------------------------------------------------------------
# Pure-JAX f32 reference (mirrors the PyTorch forward exactly)
# ----------------------------------------------------------------------------
def mlp_ref(x, weights, biases, num_layers):
    for i in range(num_layers):
        x = x @ weights[i] + biases[i]
        if i < num_layers - 1:
            x = jnp.maximum(x, 0.0)
    return x


def init_mlp(key, input_dim, hidden_dim, output_dim, num_layers):
    h = [hidden_dim] * (num_layers - 1)
    dims = list(zip([input_dim] + h, h + [output_dim]))
    keys = jax.random.split(key, 2 * num_layers)
    weights, biases = [], []
    for l, (cin, cout) in enumerate(dims):
        w = jax.random.normal(keys[2 * l], (cin, cout), jnp.float32) / jnp.sqrt(cin)
        b = 0.05 * jax.random.normal(keys[2 * l + 1], (cout,), jnp.float32)
        weights.append(w)
        biases.append(b)
    return weights, biases


if __name__ == "__main__":
    # Shapes mirroring MLP's use in denet (d_model*nhead -> d_model -> d_model):
    num_layers = 3
    input_dim, hidden_dim, output_dim = 64, 32, 32
    seq, batch = 64, 4                       # x: (seq, batch, input_dim)

    key = jax.random.PRNGKey(0)
    kx, kp = jax.random.split(key)
    x = jax.random.normal(kx, (seq, batch, input_dim), jnp.float32)
    weights, biases = init_mlp(kp, input_dim, hidden_dim, output_dim, num_layers)

    # One-time cached param prep (kept out of the per-call path).
    w_stack, b_stack = prepare_mlp_params(weights, biases)
    w_stack = jax.block_until_ready(w_stack)
    b_stack = jax.block_until_ready(b_stack)

    out = mlp_forward(x, w_stack, b_stack,
                      num_layers=num_layers, out_dim=output_dim, tile_m=128)
    out = jax.block_until_ready(out)

    ref = jax.block_until_ready(mlp_ref(x, weights, biases, num_layers))

    assert out.shape == (seq, batch, output_dim), out.shape
    max_err = float(jnp.max(jnp.abs(out - ref)))
    assert jnp.allclose(out, ref, rtol=5e-2, atol=5e-2), max_err

    print("KERNEL_OK")
</pallas_src>

<mosaic_0001>
module attributes {stable_mosaic.version = 11 : i64} {
  func.func @_mlp_kernel(%arg0: i32, %arg1: memref<128x128xbf16, #tpu.memory_space<vmem>>, %arg2: memref<3x128x128xbf16, #tpu.memory_space<vmem>>, %arg3: memref<3x1x128xf32, #tpu.memory_space<vmem>>, %arg4: memref<128x128xf32, #tpu.memory_space<vmem>>) attributes {dimension_semantics = [#tpu.dimension_semantics<parallel>], iteration_bounds = array<i64: 2>, scalar_prefetch = 0 : i64, scratch_operands = 0 : i64, tpu.core_type = #tpu.core_type<tc>, window_params = [{transform_indices = @transform_0, window_bounds = array<i64: 128, 128>}, {pipeline_mode = #tpu.pipeline_mode<synchronous>, transform_indices = @transform_1, window_bounds = array<i64: 3, 128, 128>}, {pipeline_mode = #tpu.pipeline_mode<synchronous>, transform_indices = @transform_2, window_bounds = array<i64: 3, 1, 128>}, {transform_indices = @transform_3, window_bounds = array<i64: 128, 128>}]} {
    %c0 = arith.constant 0 : index
    %c0_0 = arith.constant 0 : index
    %0 = vector.load %arg1[%c0, %c0_0] : memref<128x128xbf16, #tpu.memory_space<vmem>>, vector<128x128xbf16>
    %c0_1 = arith.constant 0 : index
    %c0_2 = arith.constant 0 : index
    %c0_3 = arith.constant 0 : index
    %1 = vector.load %arg2[%c0_1, %c0_2, %c0_3] : memref<3x128x128xbf16, #tpu.memory_space<vmem>>, vector<1x128x128xbf16>
    %2 = vector.shape_cast %1 : vector<1x128x128xbf16> to vector<128x128xbf16>
    %cst = arith.constant dense<0.000000e+00> : vector<128x128xf32>
    %3 = tpu.matmul %0, %2, %cst {dimension_numbers = #tpu.dot_dimension_numbers<[1], [0], [0], [1], [0, 0, 1, 1], [], []>} : vector<128x128xbf16>, vector<128x128xbf16>, vector<128x128xf32> -> vector<128x128xf32>
    %c0_4 = arith.constant 0 : index
    %c0_5 = arith.constant 0 : index
    %c0_6 = arith.constant 0 : index
    %4 = vector.load %arg3[%c0_4, %c0_5, %c0_6] : memref<3x1x128xf32, #tpu.memory_space<vmem>>, vector<1x1x128xf32>
    %5 = vector.shape_cast %4 : vector<1x1x128xf32> to vector<1x128xf32>
    %6 = vector.broadcast %5 : vector<1x128xf32> to vector<128x128xf32>
    %7 = arith.addf %3, %6 : vector<128x128xf32>
    %cst_7 = arith.constant 0.000000e+00 : f32
    %8 = vector.broadcast %cst_7 : f32 to vector<128x128xf32>
    %9 = arith.maximumf %7, %8 : vector<128x128xf32>
    %10 = arith.truncf %9 : vector<128x128xf32> to vector<128x128xbf16>
    %c1 = arith.constant 1 : index
    %c0_8 = arith.constant 0 : index
    %c0_9 = arith.constant 0 : index
    %11 = vector.load %arg2[%c1, %c0_8, %c0_9] : memref<3x128x128xbf16, #tpu.memory_space<vmem>>, vector<1x128x128xbf16>
    %12 = vector.shape_cast %11 : vector<1x128x128xbf16> to vector<128x128xbf16>
    %cst_10 = arith.constant dense<0.000000e+00> : vector<128x128xf32>
    %13 = tpu.matmul %10, %12, %cst_10 {dimension_numbers = #tpu.dot_dimension_numbers<[1], [0], [0], [1], [0, 0, 1, 1], [], []>} : vector<128x128xbf16>, vector<128x128xbf16>, vector<128x128xf32> -> vector<128x128xf32>
    %c1_11 = arith.constant 1 : index
    %c0_12 = arith.constant 0 : index
    %c0_13 = arith.constant 0 : index
    %14 = vector.load %arg3[%c1_11, %c0_12, %c0_13] : memref<3x1x128xf32, #tpu.memory_space<vmem>>, vector<1x1x128xf32>
    %15 = vector.shape_cast %14 : vector<1x1x128xf32> to vector<1x128xf32>
    %16 = vector.broadcast %15 : vector<1x128xf32> to vector<128x128xf32>
    %17 = arith.addf %13, %16 : vector<128x128xf32>
    %cst_14 = arith.constant 0.000000e+00 : f32
    %18 = vector.broadcast %cst_14 : f32 to vector<128x128xf32>
    %19 = arith.maximumf %17, %18 : vector<128x128xf32>
    %20 = arith.truncf %19 : vector<128x128xf32> to vector<128x128xbf16>
    %c2 = arith.constant 2 : index
    %c0_15 = arith.constant 0 : index
    %c0_16 = arith.constant 0 : index
    %21 = vector.load %arg2[%c2, %c0_15, %c0_16] : memref<3x128x128xbf16, #tpu.memory_space<vmem>>, vector<1x128x128xbf16>
    %22 = vector.shape_cast %21 : vector<1x128x128xbf16> to vector<128x128xbf16>
    %cst_17 = arith.constant dense<0.000000e+00> : vector<128x128xf32>
    %23 = tpu.matmul %20, %22, %cst_17 {dimension_numbers = #tpu.dot_dimension_numbers<[1], [0], [0], [1], [0, 0, 1, 1], [], []>} : vector<128x128xbf16>, vector<128x128xbf16>, vector<128x128xf32> -> vector<128x128xf32>
    %c2_18 = arith.constant 2 : index
    %c0_19 = arith.constant 0 : index
    %c0_20 = arith.constant 0 : index
    %24 = vector.load %arg3[%c2_18, %c0_19, %c0_20] : memref<3x1x128xf32, #tpu.memory_space<vmem>>, vector<1x1x128xf32>
    %25 = vector.shape_cast %24 : vector<1x1x128xf32> to vector<1x128xf32>
    %26 = vector.broadcast %25 : vector<1x128xf32> to vector<128x128xf32>
    %27 = arith.addf %23, %26 : vector<128x128xf32>
    %c0_21 = arith.constant 0 : index
    %c0_22 = arith.constant 0 : index
    %28 = vector.load %arg4[%c0_21, %c0_22] : memref<128x128xf32, #tpu.memory_space<vmem>>, vector<128x128xf32>
    tpu.vector_store %arg4[%c0_21, %c0_22], %27 {strides = array<i32>} : memref<128x128xf32, #tpu.memory_space<vmem>>, vector<128x128xf32>,
    return
  }
  func.func @transform_0(%arg0: i32) -> (i32, i32) {
    %c0_i32 = arith.constant 0 : i32
    %c0_i32_0 = arith.constant 0 : i32
    return %arg0, %c0_i32 : i32, i32
  }
  func.func @transform_1(%arg0: i32) -> (i32, i32, i32) {
    %c0_i32 = arith.constant 0 : i32
    %c0_i32_0 = arith.constant 0 : i32
    %c0_i32_1 = arith.constant 0 : i32
    %c0_i32_2 = arith.constant 0 : i32
    return %c0_i32, %c0_i32_0, %c0_i32_1 : i32, i32, i32
  }
  func.func @transform_2(%arg0: i32) -> (i32, i32, i32) {
    %c0_i32 = arith.constant 0 : i32
    %c0_i32_0 = arith.constant 0 : i32
    %c0_i32_1 = arith.constant 0 : i32
    %c0_i32_2 = arith.constant 0 : i32
    return %c0_i32, %c0_i32_0, %c0_i32_1 : i32, i32, i32
  }
  func.func @transform_3(%arg0: i32) -> (i32, i32) {
    %c0_i32 = arith.constant 0 : i32
    %c0_i32_0 = arith.constant 0 : i32
    return %arg0, %c0_i32 : i32, i32
  }
}

</mosaic_0001>

<bundles_post_ra>
// kernel: mlp_forward.1
= control target key start
LH: loop header
LB: loop body
LE: loop exit
PB: predicated region body
PF: predicated region fallthrough
CT: control target
= control target key end

     0   :  { %s1175_s12 = smov 0   ;;  %s1341_s0 = inlined_call_operand.vmem [shape: bf16[256,128], index: 0, kind: input, shape index: {}]   ;;  %s1342_s1 = inlined_call_operand.vmem [shape: bf16[3,128,128], index: 1, kind: input, shape index: {}]   ;;  %s1343_s2 = inlined_call_operand.vmem [shape: f32[3,1,128], index: 2, kind: input, shape index: {}]   ;;  %s1344_s3 = inlined_call_operand.vmem [shape: f32[256,128], index: 3, kind: output, shape index: {}]  }
   0x1 LB: > { %s867_s13 = sadd.s32 4294967295, %s1153_s12   ;;  %p871_p0 = scmp.ge.s32.totalorder %s1153_s12, 1  ;;  %s1153_s12 = sphi %s1175_s12, %s13_s12  }
   0x2   : > { %p138_p1 = scmp.lt.s32.totalorder %s1153_s12, 3 }
   0x4   : > { %p139_p2 = pnand %p871_p0, %p138_p1 }
   0x5   : > { %v1115_v0 = vld [vmem:[%s1342_s1] sm:$0xff] (!%p139_p2)   ;;  %s872_s16 = sshll.u32 (!%p139_p2), %s867_s13, 4  ;;  %v1116_v1 = vld [vmem:[%s1342_s1 + $0x8] sm:$0xff] (!%p139_p2)   ;;  %v1117_v2 = vld [vmem:[%s1342_s1 + $0x10] sm:$0xff] (!%p139_p2)  }
   0x6   : > { %142 = sbr.rel (%p139_p2) target bundleno = 724 (0x2d4), region = 32  ;;  %p163_p3 = scmp.lt.s32.totalorder (!%p139_p2), %s872_s16, 31  ;;  %995 = vmatprep.subr.bf16.mxu0 (!%p139_p2), %v1115_v0  ;;  %v1118_v3 = vld [vmem:[%s1342_s1 + $0x18] sm:$0xff] (!%p139_p2)   ;;  %v1119_v5 = vld [vmem:[%s1342_s1 + $0x20] sm:$0xff] (!%p139_p2)   ;;  %v1120_v6 = vld [vmem:[%s1342_s1 + $0x28] sm:$0xff] (!%p139_p2)  }
   0x7   : > { %996 = vmatpush3.bf16.msra.mxu0 (!%p139_p2), %v1115_v0  ;;  %v1131_v7 = vld [vmem:[%s1342_s1 + $0x40] sm:$0xff] (!%p139_p2)   ;;  %v1132_v8 = vld [vmem:[%s1342_s1 + $0x48] sm:$0xff] (!%p139_p2)   ;;  %v1121_v9 = vld [vmem:[%s1342_s1 + $0x30] sm:$0xff] (!%p139_p2)  }
   0x8   : > { %997 = vmatprep.subr.bf16.mxu0 (!%p139_p2), %v1116_v1  ;;  %1027 = vmatprep.subr.bf16.mxu1 (!%p139_p2), %v1131_v7  ;;  %v1133_v10 = vld [vmem:[%s1342_s1 + $0x50] sm:$0xff] (!%p139_p2)   ;;  %v1122_v11 = vld [vmem:[%s1342_s1 + $0x38] sm:$0xff] (!%p139_p2)   ;;  %v1135_v13 = vld [vmem:[%s1342_s1 + $0x60] sm:$0xff] (!%p139_p2)  }
   0x9   : > { %1028 = vmatpush3.bf16.msra.mxu1 (!%p139_p2), %v1131_v7  ;;  %v1134_v12 = vld [vmem:[%s1342_s1 + $0x58] sm:$0xff] (!%p139_p2)   ;;  %v1136_v16 = vld [vmem:[%s1342_s1 + $0x68] sm:$0xff] (!%p139_p2)   ;;  %v1137_v22 = vld [vmem:[%s1342_s1 + $0x70] sm:$0xff] (!%p139_p2)  }
   0xa   : > { %1029 = vmatprep.subr.bf16.mxu1 (!%p139_p2), %v1132_v8  ;;  %v1138_v23 = vld [vmem:[%s1342_s1 + $0x78] sm:$0xff] (!%p139_p2)   ;;  %v1139_v24 = vld [vmem:[%s1342_s1 + $0x80] sm:$0xff] (!%p139_p2)   ;;  %v1140_v25 = vld [vmem:[%s1342_s1 + $0x88] sm:$0xff] (!%p139_p2)  }
   0xb   : > { %998 = vmatpush3.bf16.msra.mxu0 (!%p139_p2), %v1116_v1  ;;  %v1141_v26 = vld [vmem:[%s1342_s1 + $0x90] sm:$0xff] (!%p139_p2)   ;;  %v1259_v27 = vld [vmem:[%s1342_s1 + $0x98] sm:$0xff] (!%p139_p2)   ;;  %v1265_v28 = vld [vmem:[%s1342_s1 + $0xa0] sm:$0xff] (!%p139_p2)  }
   0xc   : > { %999 = vmatprep.subr.bf16.mxu0 (!%p139_p2), %v1117_v2  ;;  %v1272_v29 = vld [vmem:[%s1342_s1 + $0xa8] sm:$0xff] (!%p139_p2)   ;;  %v1280_v30 = vld [vmem:[%s1343_s2] ss:$0 sm:$0xff] (!%p139_p2) }
   0xd   : > { %s1346_s16 = smov (!%p163_p3, %s872_s16), 31  ;;  %1030 = vmatpush3.bf16.msra.mxu1 %v1132_v8 }
   0xe   : > { %s873_s21 = sshll.u32 %s1346_s16, 2  ;;  %1031 = vmatprep.subr.bf16.mxu1 %v1133_v10 }
   0xf   : > { %s1198_s24 = scalar_lea.vmem %s1341_s0, %s873_s21  ;;  %1000 = vmatpush3.bf16.msra.mxu0 %v1117_v2  ;;  %s875_s21 = sshll.u32 %s1346_s16, 3 }
  0x10   : > { %v1123_v4 = vld [vmem:[%s1198_s24] sm:$0xff]   ;;  %1001 = vmatprep.subr.bf16.mxu0 %v1118_v3  ;;  %v1124_v14 = vld [vmem:[%s1198_s24 + $0x8] sm:$0xff]   ;;  %v1125_v15 = vld [vmem:[%s1198_s24 + $0x10] sm:$0xff]   ;;  %s1320_s27 = scalar_lea.vmem %s1344_s3, %s875_s21 }
  0x11   : > { %1011 = vmatprep.mubr.bf16.mxu0 %v1123_v4  ;;  %1032 = vmatpush3.bf16.msra.mxu1 %v1133_v10  ;;  %v1126_v17 = vld [vmem:[%s1198_s24 + $0x18] sm:$0xff]   ;;  %v1127_v18 = vld [vmem:[%s1198_s24 + $0x20] sm:$0xff]   ;;  %v1128_v19 = vld [vmem:[%s1198_s24 + $0x28] sm:$0xff]  }
  0x12   : > { %1033 = vmatprep.subr.bf16.mxu1 %v1134_v12  ;;  %v1129_v20 = vld [vmem:[%s1198_s24 + $0x30] sm:$0xff]   ;;  %v1130_v21 = vld [vmem:[%s1198_s24 + $0x38] sm:$0xff]  }
  0x13   : > { %1002 = vmatpush3.bf16.msra.mxu0 %v1118_v3 }
  0x14   : > { %1003 = vmatprep.subr.bf16.mxu0 %v1119_v5 }
  0x15   : > { %1034 = vmatpush3.bf16.msra.mxu1 %v1134_v12 }
  0x16   : > { %1035 = vmatprep.subr.bf16.mxu1 %v1135_v13 }
  0x17   : > { %1004 = vmatpush3.bf16.msra.mxu0 %v1119_v5 }
  0x18   : > { %1005 = vmatprep.subr.bf16.mxu0 %v1120_v6 }
  0x19   : > { %1036 = vmatpush3.bf16.msra.mxu1 %v1135_v13 }
  0x1a   : > { %1037 = vmatprep.subr.bf16.mxu1 %v1136_v16 }
  0x1b   : > { %1006 = vmatpush3.bf16.msra.mxu0 %v1120_v6 }
  0x1c   : > { %1007 = vmatprep.subr.bf16.mxu0 %v1121_v9 }
  0x1d   : > { %1038 = vmatpush3.bf16.msra.mxu1 %v1136_v16 }
  0x1e   : > { %1039 = vmatprep.subr.bf16.mxu1 %v1137_v22 }
  0x1f   : > { %1008 = vmatpush3.bf16.msra.mxu0 %v1121_v9 }
  0x20   : > { %1009 = vmatprep.subr.bf16.mxu0 %v1122_v11 }
  0x21   : > { %1040 = vmatpush3.bf16.msra.mxu1 %v1137_v22 }
  0x22   : > { %1041 = vmatprep.subr.bf16.mxu1 %v1138_v23 }
  0x23   : > { %1010 = vmatpush3.bf16.msra.mxu0 %v1122_v11 }
  0x24   : > { %1059 = vmatprep.subr.bf16.mxu0 %v1139_v24 }
  0x25   : > { %1042 = vmatpush3.bf16.msra.mxu1 %v1138_v23  ;;  %v1145_v23 = vld [vmem:[%s1342_s1 + $0xb0] sm:$0xff]  }
  0x26   : > { %1012 = vmatmul.mubr.bf16.vlgmr.msra.gmra.mrb[0].mxu0 %v1124_v14  ;;  %1091 = vmatprep.subr.bf16.mxu1 %v1139_v24 }
  0x27   : > { %1015 = vmatprep.mubr.bf16.mxu0 %v1125_v15  ;;  %1060 = vmatpush3.bf16.msra.mxu0 %v1139_v24 }
  0x28   : > { %1061 = vmatprep.subr.bf16.mxu0 %v1140_v25 }
  0x2b   : > { %1062 = vmatpush3.bf16.msra.mxu0 %v1140_v25 }
  0x2c   : > { %1063 = vmatprep.subr.bf16.mxu0 %v1141_v26 }
  0x2e   : > { %1016 = vmatmul.mubr.bf16.gmra.mrb[4].mxu0 %v1126_v17 }
  0x2f   : > { %1019 = vmatprep.mubr.bf16.mxu0 %v1127_v18  ;;  %1064 = vmatpush3.bf16.msra.mxu0 %v1141_v26 }
  0x30   : > { %1065 = vmatprep.subr.bf16.mxu0 %v1259_v27 }
  0x33   : > { %1066 = vmatpush3.bf16.msra.mxu0 %v1259_v27 }
  0x34   : > { %1067 = vmatprep.subr.bf16.mxu0 %v1265_v28 }
  0x36   : > { %1020 = vmatmul.mubr.bf16.gmra.mrb[8].mxu0 %v1128_v19 }
  0x37   : > { %1023 = vmatprep.mubr.bf16.mxu0 %v1129_v20  ;;  %1068 = vmatpush3.bf16.msra.mxu0 %v1265_v28 }
  0x38   : > { %1069 = vmatprep.subr.bf16.mxu0 %v1272_v29 }
  0x3b   : > { %1070 = vmatpush3.bf16.msra.mxu0 %v1272_v29 }
  0x3c   : > { %1071 = vmatprep.subr.bf16.mxu0 %v1145_v23 }
  0x3e   : > { %1024 = vmatmul.mubr.bf16.gmra.mrb[12].mxu0 %v1130_v21 }
  0x3f   : > { %1072 = vmatpush3.bf16.msra.mxu0 %v1145_v23 }
  0xf9   : > { %v1013_v31 = vpop.f32.mrb[0].mxu0 }
  0xfa   : > { %v353_v32 = vadd.f32 %v1013_v31, %v1280_v30  ;;  %v344_v33 = vpop.f32.mrb[1].mxu0 }
  0xfb   : > { %v345_v34 = vadd.f32 %v1280_v30, %v344_v33  ;;  %v1014_v35 = vpop.f32.mrb[2].mxu0 }
  0xfc   : > { %v356_v36 = vadd.f32 %v1014_v35, %v1280_v30  ;;  %v347_v37 = vpop.f32.mrb[3].mxu0  ;;  %v409_v39 = vmax.f32 %v353_v32, 0.0 }
  0xfd   : > { %v348_v38 = vadd.f32 %v1280_v30, %v347_v37  ;;  %v407_v41 = vmax.f32 %v345_v34, 0.0 }
  0xfe   : > { %v410_v40 = vmax.f32 %v356_v36, 0.0 }
  0xff   : > { %v408_v42 = vmax.f32 %v348_v38, 0.0 }
 0x100   : > { %v424_v43 = vpack.c.bf16 %v410_v40, %v409_v39 }
 0x101   : > { %v1017_v44 = vpop.f32.mrb[4].mxu0  ;;  %v423_v45 = vpack.c.bf16 %v408_v42, %v407_v41 }
 0x102   : > { %v369_v46 = vadd.f32 %v1017_v44, %v1280_v30  ;;  %v360_v47 = vpop.f32.mrb[5].mxu0 }
 0x103   : > { %v361_v48 = vadd.f32 %v1280_v30, %v360_v47  ;;  %v1018_v49 = vpop.f32.mrb[6].mxu0  ;;  %1043 = vmatprep.mubr.bf16.mxu1 %v423_v45 }
 0x104   : > { %v372_v50 = vadd.f32 %v1018_v49, %v1280_v30  ;;  %v363_v51 = vpop.f32.mrb[7].mxu0  ;;  %1044 = vmatmul.mubr.bf16.vlgmr.msra.gmra.mrb[0].mxu1 %v424_v43  ;;  %v413_v53 = vmax.f32 %v369_v46, 0.0 }
 0x105   : > { %v364_v52 = vadd.f32 %v1280_v30, %v363_v51  ;;  %1099 = vmatpush3.bf16.msra.mxu1 %v1139_v24  ;;  %v411_v55 = vmax.f32 %v361_v48, 0.0  ;;  %v1146_v24 = vld [vmem:[%s1342_s1 + $0xb8] sm:$0xff]  }
 0x106   : > { %v414_v54 = vmax.f32 %v372_v50, 0.0  ;;  %1092 = vmatprep.subr.bf16.mxu1 %v1140_v25  ;;  %1073 = vmatprep.subr.bf16.mxu0 %v1146_v24 }
 0x107   : > { %v412_v56 = vmax.f32 %v364_v52, 0.0  ;;  %1074 = vmatpush3.bf16.msra.mxu0 %v1146_v24 }
 0x108   : > { %v426_v57 = vpack.c.bf16 %v414_v54, %v413_v53 }
 0x109   : > { %v425_v58 = vpack.c.bf16 %v412_v56, %v411_v55  ;;  %v1021_v59 = vpop.f32.mrb[8].mxu0  ;;  %1100 = vmatpush3.bf16.msra.mxu1 %v1140_v25  ;;  %v910_v25 = vld [vmem:[%s1343_s2 + $0x1] ss:$0 sm:$0xff] }
 0x10a   : > { %v385_v60 = vadd.f32 %v1021_v59, %v1280_v30  ;;  %v376_v61 = vpop.f32.mrb[9].mxu0  ;;  %1093 = vmatprep.subr.bf16.mxu1 %v1141_v26 }
 0x10b   : > { %v377_v62 = vadd.f32 %v1280_v30, %v376_v61  ;;  %v1022_v63 = vpop.f32.mrb[10].mxu0  ;;  %1047 = vmatprep.mubr.bf16.mxu1 %v425_v58 }
 0x10c   : > { %v388_v0 = vadd.f32 %v1022_v63, %v1280_v30  ;;  %v379_v1 = vpop.f32.mrb[11].mxu0  ;;  %1048 = vmatmul.mubr.bf16.gmra.mrb[4].mxu1 %v426_v57  ;;  %v417_v3 = vmax.f32 %v385_v60, 0.0 }
 0x10d   : > { %v380_v2 = vadd.f32 %v1280_v30, %v379_v1  ;;  %1101 = vmatpush3.bf16.msra.mxu1 %v1141_v26  ;;  %v415_v5 = vmax.f32 %v377_v62, 0.0 }
 0x10e   : > { %v418_v4 = vmax.f32 %v388_v0, 0.0  ;;  %1094 = vmatprep.subr.bf16.mxu1 %v1259_v27 }
 0x10f   : > { %v416_v6 = vmax.f32 %v380_v2, 0.0 }
 0x110   : > { %v428_v7 = vpack.c.bf16 %v418_v4, %v417_v3 }
 0x111   : > { %v427_v8 = vpack.c.bf16 %v416_v6, %v415_v5  ;;  %v1025_v9 = vpop.f32.mrb[12].mxu0  ;;  %1102 = vmatpush3.bf16.msra.mxu1 %v1259_v27 }
 0x112   : > { %v401_v10 = vadd.f32 %v1025_v9, %v1280_v30  ;;  %v392_v11 = vpop.f32.mrb[13].mxu0  ;;  %1095 = vmatprep.subr.bf16.mxu1 %v1265_v28 }
 0x113   : > { %v393_v12 = vadd.f32 %v1280_v30, %v392_v11  ;;  %v1026_v13 = vpop.f32.mrb[14].mxu0  ;;  %1051 = vmatprep.mubr.bf16.mxu1 %v427_v8 }
 0x114   : > { %v404_v14 = vadd.f32 %v1026_v13, %v1280_v30  ;;  %v395_v15 = vpop.f32.mrb[15].mxu0  ;;  %1052 = vmatmul.mubr.bf16.gmra.mrb[8].mxu1 %v428_v7  ;;  %v421_v17 = vmax.f32 %v401_v10, 0.0 }
 0x115   : > { %v396_v16 = vadd.f32 %v1280_v30, %v395_v15  ;;  %1103 = vmatpush3.bf16.msra.mxu1 %v1265_v28  ;;  %v419_v19 = vmax.f32 %v393_v12, 0.0 }
 0x116   : > { %v422_v18 = vmax.f32 %v404_v14, 0.0  ;;  %1096 = vmatprep.subr.bf16.mxu1 %v1272_v29 }
 0x117   : > { %v420_v20 = vmax.f32 %v396_v16, 0.0 }
 0x118   : > { %v430_v21 = vpack.c.bf16 %v422_v18, %v421_v17  ;;  %v936_v18 = vld [vmem:[%s1343_s2 + $0x2] ss:$0 sm:$0xff] }
 0x119   : > { %v429_v22 = vpack.c.bf16 %v420_v20, %v419_v19  ;;  %1104 = vmatpush3.bf16.msra.mxu1 %v1272_v29 }
 0x11a   : > { %1097 = vmatprep.subr.bf16.mxu1 %v1145_v23 }
 0x11b   : > { %1055 = vmatprep.mubr.bf16.mxu1 %v429_v22 }
 0x11c   : > { %1056 = vmatmul.mubr.bf16.gmra.mrb[12].mxu1 %v430_v21 }
 0x11d   : > { %1105 = vmatpush3.bf16.msra.mxu1 %v1145_v23 }
 0x11e   : > { %1098 = vmatprep.subr.bf16.mxu1 %v1146_v24 }
 0x121   : > { %1106 = vmatpush3.bf16.msra.mxu1 %v1146_v24 }
 0x1d7   : > { %v1045_v26 = vpop.f32.mrb[0].mxu1 }
 0x1d8   : > { %v547_v27 = vadd.f32 %v1045_v26, %v910_v25  ;;  %v538_v28 = vpop.f32.mrb[1].mxu1 }
 0x1d9   : > { %v539_v29 = vadd.f32 %v910_v25, %v538_v28  ;;  %v1046_v30 = vpop.f32.mrb[2].mxu1 }
 0x1da   : > { %v550_v31 = vadd.f32 %v1046_v30, %v910_v25  ;;  %v541_v32 = vpop.f32.mrb[3].mxu1  ;;  %v603_v34 = vmax.f32 %v547_v27, 0.0 }
 0x1db   : > { %v542_v33 = vadd.f32 %v910_v25, %v541_v32  ;;  %v601_v36 = vmax.f32 %v539_v29, 0.0 }
 0x1dc   : > { %v604_v35 = vmax.f32 %v550_v31, 0.0 }
 0x1dd   : > { %v602_v37 = vmax.f32 %v542_v33, 0.0 }
 0x1de   : > { %v618_v38 = vpack.c.bf16 %v604_v35, %v603_v34 }
 0x1df   : > { %v617_v39 = vpack.c.bf16 %v602_v37, %v601_v36  ;;  %v1049_v40 = vpop.f32.mrb[4].mxu1 }
 0x1e0   : > { %v563_v41 = vadd.f32 %v1049_v40, %v910_v25  ;;  %v554_v42 = vpop.f32.mrb[5].mxu1 }
 0x1e1   : > { %v555_v43 = vadd.f32 %v910_v25, %v554_v42  ;;  %v1050_v44 = vpop.f32.mrb[6].mxu1  ;;  %1075 = vmatprep.mubr.bf16.mxu0 %v617_v39 }
 0x1e2   : > { %v566_v45 = vadd.f32 %v1050_v44, %v910_v25  ;;  %v557_v46 = vpop.f32.mrb[7].mxu1  ;;  %1076 = vmatmul.mubr.bf16.vlgmr.msra.gmra.mrb[16].mxu0 %v618_v38  ;;  %v607_v48 = vmax.f32 %v563_v41, 0.0 }
 0x1e3   : > { %v558_v47 = vadd.f32 %v910_v25, %v557_v46  ;;  %v605_v50 = vmax.f32 %v555_v43, 0.0 }
 0x1e4   : > { %v608_v49 = vmax.f32 %v566_v45, 0.0 }
 0x1e5   : > { %v606_v51 = vmax.f32 %v558_v47, 0.0 }
 0x1e6   : > { %v620_v52 = vpack.c.bf16 %v608_v49, %v607_v48 }
 0x1e7   : > { %v619_v53 = vpack.c.bf16 %v606_v51, %v605_v50  ;;  %v1053_v54 = vpop.f32.mrb[8].mxu1 }
 0x1e8   : > { %v579_v55 = vadd.f32 %v1053_v54, %v910_v25  ;;  %v570_v56 = vpop.f32.mrb[9].mxu1 }
 0x1e9   : > { %v571_v57 = vadd.f32 %v910_v25, %v570_v56  ;;  %v1054_v58 = vpop.f32.mrb[10].mxu1  ;;  %1079 = vmatprep.mubr.bf16.mxu0 %v619_v53 }
 0x1ea   : > { %v582_v59 = vadd.f32 %v1054_v58, %v910_v25  ;;  %v573_v60 = vpop.f32.mrb[11].mxu1  ;;  %1080 = vmatmul.mubr.bf16.gmra.mrb[20].mxu0 %v620_v52  ;;  %v611_v62 = vmax.f32 %v579_v55, 0.0 }
 0x1eb   : > { %v574_v61 = vadd.f32 %v910_v25, %v573_v60  ;;  %v609_v0 = vmax.f32 %v571_v57, 0.0 }
 0x1ec   : > { %v612_v63 = vmax.f32 %v582_v59, 0.0 }
 0x1ed   : > { %v610_v1 = vmax.f32 %v574_v61, 0.0 }
 0x1ee   : > { %v622_v2 = vpack.c.bf16 %v612_v63, %v611_v62 }
 0x1ef   : > { %v621_v3 = vpack.c.bf16 %v610_v1, %v609_v0  ;;  %v1057_v4 = vpop.f32.mrb[12].mxu1 }
 0x1f0   : > { %v595_v5 = vadd.f32 %v1057_v4, %v910_v25  ;;  %v586_v6 = vpop.f32.mrb[13].mxu1 }
 0x1f1   : > { %v587_v7 = vadd.f32 %v910_v25, %v586_v6  ;;  %v1058_v8 = vpop.f32.mrb[14].mxu1  ;;  %1083 = vmatprep.mubr.bf16.mxu1 %v621_v3 }
 0x1f2   : > { %v598_v9 = vadd.f32 %v1058_v8, %v910_v25  ;;  %v589_v10 = vpop.f32.mrb[15].mxu1  ;;  %1084 = vmatmul.mubr.bf16.vlgmr.msra.gmra.mrb[16].mxu1 %v622_v2  ;;  %v615_v12 = vmax.f32 %v595_v5, 0.0 }
 0x1f3   : > { %v590_v11 = vadd.f32 %v910_v25, %v589_v10  ;;  %v613_v14 = vmax.f32 %v587_v7, 0.0 }
 0x1f4   : > { %v616_v13 = vmax.f32 %v598_v9, 0.0 }
 0x1f5   : > { %v614_v15 = vmax.f32 %v590_v11, 0.0 }
 0x1f6   : > { %v624_v16 = vpack.c.bf16 %v616_v13, %v615_v12 }
 0x1f7   : > { %v623_v17 = vpack.c.bf16 %v614_v15, %v613_v14 }
 0x1f9   : > { %1087 = vmatprep.mubr.bf16.mxu1 %v623_v17 }
 0x1fa   : > { %1088 = vmatmul.mubr.bf16.gmra.mrb[20].mxu1 %v624_v16 }
 0x2b5   : > { %v1077_v19 = vpop.f32.mrb[16].mxu0 }
 0x2b6   : > { %v741_v20 = vadd.f32 %v1077_v19, %v936_v18  ;;  %v732_v21 = vpop.f32.mrb[17].mxu0 }
 0x2b7   : > { %v733_v22 = vadd.f32 %v936_v18, %v732_v21  ;;  %v1078_v23 = vpop.f32.mrb[18].mxu0 }
 0x2b8   : > { %797 = vst [vmem:[%s1320_s27 + $0x10] sm:$0xff] %v741_v20  ;;  %v744_v24 = vadd.f32 %v1078_v23, %v936_v18  ;;  %v735_v25 = vpop.f32.mrb[19].mxu0 }
 0x2b9   : > { %795 = vst [vmem:[%s1320_s27] sm:$0xff] %v733_v22  ;;  %v736_v26 = vadd.f32 %v936_v18, %v735_v25 }
 0x2ba   : > { %798 = vst [vmem:[%s1320_s27 + $0x18] sm:$0xff] %v744_v24 }
 0x2bb   : > { %796 = vst [vmem:[%s1320_s27 + $0x8] sm:$0xff] %v736_v26 }
 0x2bd   : > { %v1081_v27 = vpop.f32.mrb[20].mxu0 }
 0x2be   : > { %v757_v28 = vadd.f32 %v1081_v27, %v936_v18  ;;  %v748_v29 = vpop.f32.mrb[21].mxu0 }
 0x2bf   : > { %v749_v30 = vadd.f32 %v936_v18, %v748_v29  ;;  %v1082_v31 = vpop.f32.mrb[22].mxu0 }
 0x2c0   : > { %801 = vst [vmem:[%s1320_s27 + $0x30] sm:$0xff] %v757_v28  ;;  %v760_v32 = vadd.f32 %v1082_v31, %v936_v18  ;;  %v751_v33 = vpop.f32.mrb[23].mxu0 }
 0x2c1   : > { %799 = vst [vmem:[%s1320_s27 + $0x20] sm:$0xff] %v749_v30  ;;  %v752_v34 = vadd.f32 %v936_v18, %v751_v33 }
 0x2c2   : > { %802 = vst [vmem:[%s1320_s27 + $0x38] sm:$0xff] %v760_v32 }
 0x2c3   : > { %800 = vst [vmem:[%s1320_s27 + $0x28] sm:$0xff] %v752_v34 }
 0x2c5   : > { %v1085_v35 = vpop.f32.mrb[16].mxu1 }
 0x2c6   : > { %v773_v36 = vadd.f32 %v1085_v35, %v936_v18  ;;  %v764_v37 = vpop.f32.mrb[17].mxu1 }
 0x2c7   : > { %v765_v38 = vadd.f32 %v936_v18, %v764_v37  ;;  %v1086_v39 = vpop.f32.mrb[18].mxu1 }
 0x2c8   : > { %805 = vst [vmem:[%s1320_s27 + $0x50] sm:$0xff] %v773_v36  ;;  %v776_v40 = vadd.f32 %v1086_v39, %v936_v18  ;;  %v767_v41 = vpop.f32.mrb[19].mxu1 }
 0x2c9   : > { %803 = vst [vmem:[%s1320_s27 + $0x40] sm:$0xff] %v765_v38  ;;  %v768_v42 = vadd.f32 %v936_v18, %v767_v41 }
 0x2ca   : > { %806 = vst [vmem:[%s1320_s27 + $0x58] sm:$0xff] %v776_v40 }
 0x2cb   : > { %804 = vst [vmem:[%s1320_s27 + $0x48] sm:$0xff] %v768_v42 }
 0x2cd   : > { %v1089_v43 = vpop.f32.mrb[20].mxu1 }
 0x2ce   : > { %v789_v44 = vadd.f32 %v1089_v43, %v936_v18  ;;  %v780_v45 = vpop.f32.mrb[21].mxu1 }
 0x2cf   : > { %v781_v46 = vadd.f32 %v936_v18, %v780_v45  ;;  %v1090_v47 = vpop.f32.mrb[22].mxu1 }
 0x2d0   : > { %809 = vst [vmem:[%s1320_s27 + $0x70] sm:$0xff] %v789_v44  ;;  %v792_v48 = vadd.f32 %v1090_v47, %v936_v18  ;;  %v783_v49 = vpop.f32.mrb[23].mxu1 }
 0x2d1   : > { %807 = vst [vmem:[%s1320_s27 + $0x60] sm:$0xff] %v781_v46  ;;  %v784_v50 = vadd.f32 %v936_v18, %v783_v49 }
 0x2d2   : > { %810 = vst [vmem:[%s1320_s27 + $0x78] sm:$0xff] %v792_v48 }
 0x2d3   : > { %808 = vst [vmem:[%s1320_s27 + $0x68] sm:$0xff] %v784_v50 }
 0x2d4 PF: > { %s13_s12 = sadd.s32 1, %s1153_s12  }
 0x2d5   : > { %p10_p4 = scmp.ge.s32.totalorder %s13_s12, 4  }
 0x2d7   :  { %12 = sbr.rel (!%p10_p4) target bundleno = 1 (0x1), region = 66 }

</bundles_post_ra>
